<compile_context>
chip_gen: v6e
topology: v6e:2x2x1
jax: 0.10.0
libtpu: 0.0.40
codegen_flags: <defaults>
</compile_context>

<pallas_src>
import functools

import jax
import jax.numpy as jnp
from jax.experimental import pallas as pl
from jax.experimental.pallas import tpu as pltpu


def _round_up(x, m):
    return (x + m - 1) // m * m


def _gated_unit_kernel(x_ref, xt_ref, w_ref, b_ref, out_ref, *, dp):
    """One batch tile: fused projection -> gate -> blend.

    x_ref  : (TB, Dg+Dt)   fused [graph | text] activations (native dtype)
    xt_ref : (TB, dp)      text rep padded to dp lanes (for the blend)
    w_ref  : (Dg+Dt, 2*dp) block-diagonal fused weight  -> [h | s]
    b_ref  : (1, 2*dp)     fused bias [bg | bt] (f32)
    out_ref: (TB, dp)      lane-dense output tile
    """
    # Single MXU call; operands stay in native dtype, accumulate in f32.
    hs = jnp.dot(x_ref[...], w_ref[...], preferred_element_type=jnp.float32)
    hs = hs + b_ref[...]                      # (1, 2*dp) broadcast, f32

    h = hs[:, :dp]                            # graph projection (+ bg)
    s = hs[:, dp:]                            # text  projection (+ bt)
    z = jax.nn.sigmoid(h + s)                 # gate in [0,1] (EUP exp path)

    xt = xt_ref[...].astype(jnp.float32)
    out = xt + z * (h - xt)                   # == z*h + (1-z)*xt, one fewer VPU mul
    out_ref[...] = out.astype(out_ref.dtype)


def gated_unit(graph_rep, text_rep, wg, bg, wt, bt, *, block_m=256):
    """graph_rep: [B, Dg], text_rep: [B, Dt] -> [B, Dt]."""
    B, Dg = graph_rep.shape
    B2, Dt = text_rep.shape
    assert B == B2
    assert wg.shape == (Dg, Dt) and wt.shape == (Dt, Dt)
    assert bg.shape == (1, Dt) and bt.shape == (1, Dt)

    out_dtype = text_rep.dtype
    mm_dtype = graph_rep.dtype            # keep native: bf16 inputs hit the MXU as bf16

    # Lane-dense padding: each projection occupies dp lanes (multiple of 128).
    dp = max(128, _round_up(Dt, 128))
    k = Dg + Dt

    # Batch tiling: TB multiple of 8; weights stay resident across grid steps.
    tb = min(block_m, _round_up(B, 8))
    m_pad = _round_up(B, tb)

    # Fused activation X = [graph | text]  -> (m_pad, K).
    x = jnp.concatenate(
        [graph_rep.astype(mm_dtype), text_rep.astype(mm_dtype)], axis=-1)
    x = jnp.pad(x, ((0, m_pad - B), (0, 0)))

    # Text rep padded to dp lanes for the VPU blend.
    xt = jnp.pad(text_rep, ((0, m_pad - B), (0, dp - Dt)))

    # Block-diagonal fused weight (K, 2*dp): X @ W + b = [h | s].
    # NOTE: in a real model this packing happens once at parameter-init time.
    w = jnp.zeros((k, 2 * dp), mm_dtype)
    w = w.at[:Dg, :Dt].set(wg.astype(mm_dtype))
    w = w.at[Dg:, dp:dp + Dt].set(wt.astype(mm_dtype))
    b = jnp.zeros((1, 2 * dp), jnp.float32)
    b = b.at[:, :Dt].set(bg.astype(jnp.float32))
    b = b.at[:, dp:dp + Dt].set(bt.astype(jnp.float32))

    grid = (m_pad // tb,)
    kernel = functools.partial(_gated_unit_kernel, dp=dp)

    out_bytes = m_pad * dp * jnp.dtype(out_dtype).itemsize
    cost = pl.CostEstimate(
        flops=2 * m_pad * k * 2 * dp,
        transcendentals=m_pad * dp,            # sigmoid exp per output element
        bytes_accessed=(x.size * x.dtype.itemsize + xt.size * xt.dtype.itemsize
                        + w.size * w.dtype.itemsize + b.size * 4 + out_bytes),
    )

    out = pl.pallas_call(
        kernel,
        out_shape=jax.ShapeDtypeStruct((m_pad, dp), out_dtype),
        grid=grid,
        in_specs=[
            pl.BlockSpec((tb, k), lambda i: (i, 0)),        # fused activations (tiled)
            pl.BlockSpec((tb, dp), lambda i: (i, 0)),       # padded text (tiled)
            pl.BlockSpec((k, 2 * dp), lambda i: (0, 0)),    # fused weight (resident)
            pl.BlockSpec((1, 2 * dp), lambda i: (0, 0)),    # fused bias (resident)
        ],
        out_specs=pl.BlockSpec((tb, dp), lambda i: (i, 0)),
        compiler_params=pltpu.CompilerParams(
            # Batch axis is embarrassingly parallel -> megacore sharding on v7x.
            dimension_semantics=("parallel",),
        ),
        cost_estimate=cost,
    )(x, xt, w, b)

    return out[:B, :Dt]


def _reference(graph_rep, text_rep, wg, bg, wt, bt):
    h = graph_rep @ wg + bg
    s = text_rep @ wt + bt
    z = jax.nn.sigmoid(h + s)
    return z * h + (1.0 - z) * text_rep


if __name__ == "__main__":
    key = jax.random.PRNGKey(0)
    B, Dg, Dt = 8, 48, 32   # small demo shapes: batch=8, graph_rep=48, text_rep=32

    k1, k2, k3, k4, k5, k6 = jax.random.split(key, 6)
    graph_rep = jax.random.normal(k1, (B, Dg), dtype=jnp.float32)
    text_rep = jax.random.normal(k2, (B, Dt), dtype=jnp.float32)

    # Deterministic parameter init (Linear-like fan-in scaling).
    wg = jax.random.normal(k3, (Dg, Dt), dtype=jnp.float32) / jnp.sqrt(Dg)
    bg = jax.random.normal(k4, (1, Dt), dtype=jnp.float32) * 0.01
    wt = jax.random.normal(k5, (Dt, Dt), dtype=jnp.float32) / jnp.sqrt(Dt)
    bt = jax.random.normal(k6, (1, Dt), dtype=jnp.float32) * 0.01

    out = gated_unit(graph_rep, text_rep, wg, bg, wt, bt)
    out = jax.block_until_ready(out)

    ref = _reference(graph_rep, text_rep, wg, bg, wt, bt)
    assert out.shape == (B, Dt)
    assert jnp.allclose(out, ref, atol=1e-4, rtol=1e-4), "mismatch vs JAX reference"

    print("KERNEL_OK")
</pallas_src>

<mosaic_0001>
module attributes {stable_mosaic.version = 11 : i64} {
  func.func @_gated_unit_kernel(%arg0: i32, %arg1: memref<8x80xf32, #tpu.memory_space<vmem>>, %arg2: memref<8x128xf32, #tpu.memory_space<vmem>>, %arg3: memref<80x256xf32, #tpu.memory_space<vmem>>, %arg4: memref<1x256xf32, #tpu.memory_space<vmem>>, %arg5: memref<8x128xf32, #tpu.memory_space<vmem>>) attributes {dimension_semantics = [#tpu.dimension_semantics<parallel>], iteration_bounds = array<i64: 1>, scalar_prefetch = 0 : i64, scratch_operands = 0 : i64, tpu.core_type = #tpu.core_type<tc>, window_params = [{transform_indices = @transform_0, window_bounds = array<i64: 8, 80>}, {transform_indices = @transform_1, window_bounds = array<i64: 8, 128>}, {pipeline_mode = #tpu.pipeline_mode<synchronous>, transform_indices = @transform_2, window_bounds = array<i64: 80, 256>}, {pipeline_mode = #tpu.pipeline_mode<synchronous>, transform_indices = @transform_3, window_bounds = array<i64: 1, 256>}, {transform_indices = @transform_4, window_bounds = array<i64: 8, 128>}]} {
    %c0 = arith.constant 0 : index
    %c0_0 = arith.constant 0 : index
    %0 = vector.load %arg1[%c0, %c0_0] : memref<8x80xf32, #tpu.memory_space<vmem>>, vector<8x80xf32>
    %c0_1 = arith.constant 0 : index
    %c0_2 = arith.constant 0 : index
    %1 = vector.load %arg3[%c0_1, %c0_2] : memref<80x256xf32, #tpu.memory_space<vmem>>, vector<80x256xf32>
    %cst = arith.constant dense<0.000000e+00> : vector<8x256xf32>
    %2 = tpu.matmul %0, %1, %cst {dimension_numbers = #tpu.dot_dimension_numbers<[1], [0], [0], [1], [0, 0, 1, 1], [], []>} : vector<8x80xf32>, vector<80x256xf32>, vector<8x256xf32> -> vector<8x256xf32>
    %c0_3 = arith.constant 0 : index
    %c0_4 = arith.constant 0 : index
    %3 = vector.load %arg4[%c0_3, %c0_4] : memref<1x256xf32, #tpu.memory_space<vmem>>, vector<1x256xf32>
    %4 = vector.broadcast %3 : vector<1x256xf32> to vector<8x256xf32>
    %5 = arith.addf %2, %4 : vector<8x256xf32>
    %6 = vector.extract_strided_slice %5 {offsets = [0, 0], sizes = [8, 128], strides = [1, 1]} : vector<8x256xf32> to vector<8x128xf32>
    %7 = vector.extract_strided_slice %5 {offsets = [0, 128], sizes = [8, 128], strides = [1, 1]} : vector<8x256xf32> to vector<8x128xf32>
    %8 = arith.addf %6, %7 : vector<8x128xf32>
    %9 = arith.negf %8 : vector<8x128xf32>
    %10 = math.exp %9 : vector<8x128xf32>
    %cst_5 = arith.constant 1.000000e+00 : f32
    %11 = vector.broadcast %cst_5 : f32 to vector<8x128xf32>
    %12 = arith.addf %11, %10 : vector<8x128xf32>
    %13 = arith.divf %11, %12 : vector<8x128xf32>
    %c0_6 = arith.constant 0 : index
    %c0_7 = arith.constant 0 : index
    %14 = vector.load %arg2[%c0_6, %c0_7] : memref<8x128xf32, #tpu.memory_space<vmem>>, vector<8x128xf32>
    %15 = arith.subf %6, %14 : vector<8x128xf32>
    %16 = arith.mulf %13, %15 : vector<8x128xf32>
    %17 = arith.addf %14, %16 : vector<8x128xf32>
    %c0_8 = arith.constant 0 : index
    %c0_9 = arith.constant 0 : index
    %18 = vector.load %arg5[%c0_8, %c0_9] : memref<8x128xf32, #tpu.memory_space<vmem>>, vector<8x128xf32>
    tpu.vector_store %arg5[%c0_8, %c0_9], %17 {strides = array<i32>} : memref<8x128xf32, #tpu.memory_space<vmem>>, vector<8x128xf32>,
    return
  }
  func.func @transform_0(%arg0: i32) -> (i32, i32) {
    %c0_i32 = arith.constant 0 : i32
    %c0_i32_0 = arith.constant 0 : i32
    return %arg0, %c0_i32 : i32, i32
  }
  func.func @transform_1(%arg0: i32) -> (i32, i32) {
    %c0_i32 = arith.constant 0 : i32
    %c0_i32_0 = arith.constant 0 : i32
    return %arg0, %c0_i32 : i32, i32
  }
  func.func @transform_2(%arg0: i32) -> (i32, i32) {
    %c0_i32 = arith.constant 0 : i32
    %c0_i32_0 = arith.constant 0 : i32
    %c0_i32_1 = arith.constant 0 : i32
    return %c0_i32, %c0_i32_0 : i32, i32
  }
  func.func @transform_3(%arg0: i32) -> (i32, i32) {
    %c0_i32 = arith.constant 0 : i32
    %c0_i32_0 = arith.constant 0 : i32
    %c0_i32_1 = arith.constant 0 : i32
    return %c0_i32, %c0_i32_0 : i32, i32
  }
  func.func @transform_4(%arg0: i32) -> (i32, i32) {
    %c0_i32 = arith.constant 0 : i32
    %c0_i32_0 = arith.constant 0 : i32
    return %arg0, %c0_i32 : i32, i32
  }
}

</mosaic_0001>

<bundles_post_ra>
// kernel: tpu_custom_call.1
= control target key start
LH: loop header
LB: loop body
LE: loop exit
PB: predicated region body
PF: predicated region fallthrough
CT: control target
= control target key end

     0   :  { %9 = vsyncpa [#allocation3], 0  ;;  %s337_s0 = inlined_call_operand.hbm [shape: f32[8,80], index: 0, kind: input, shape index: {}]   ;;  %s338_s1 = inlined_call_operand.hbm [shape: f32[8,128], index: 1, kind: input, shape index: {}]   ;;  %s339_s2 = inlined_call_operand.hbm [shape: f32[80,256], index: 2, kind: input, shape index: {}]   ;;  %s340_s3 = inlined_call_operand.vmem [shape: f32[1,256], index: 3, kind: input, shape index: {}]   ;;  %s341_s4 = inlined_call_operand.hbm [shape: f32[8,128], index: 4, kind: output, shape index: {}]  }
   0x1   :  { %10 = vsyncpa [#allocation6], 0 }
   0x2   :  { %11 = vsyncpa [#allocation4], 0  ;;  %s290_s15 = smov [#allocation5]   ;;  %s291_s17 = smov [#allocation2]  }
   0x3   :  { %s28_s16 = sshll.u32 %s290_s15, 4  ;;  %s18_s18 = sshll.u32 %s291_s17, 4  ;;  %s29_s16 = int_to_ptr.vmem [resolvable:$true] %s28_s16  ;;  %s19_s18 = int_to_ptr.vmem [resolvable:$true] %s18_s18 }
   0x4   :  { %s212_s19 = scalar_lea.vmem %s29_s16, 128  ;;  %p217_p1 = scmp.lt.s32.totalorder %s29_s16, %s29_s16 }
   0x5   :  { %p213_p0 = scmp.ne.s32.totalorder %s29_s16, %s212_s19  ;;  %p218_p2 = scmp.lt.s32.totalorder %s212_s19, %s212_s19 }
   0x7   :  { %p219_p3 = por %p218_p2, %p217_p1 }
   0x9   :  { %p220_p4 = pnand %p219_p3, %p213_p0 }
   0xb   :  { %223 = shalt.err (!%p220_p4)
}
   0xc   :  { %31 = dma.hbm_to_vmem [thread:$0]  %s338_s1, 128, %s29_s16, [#allocation6]  }
   0xd   :  { %s232_s22 = scalar_lea.vmem %s19_s18, 128  ;;  %p237_p6 = scmp.lt.s32.totalorder %s19_s18, %s19_s18 }
   0xe   :  { %p233_p5 = scmp.ne.s32.totalorder %s19_s18, %s232_s22  ;;  %p238_p7 = scmp.lt.s32.totalorder %s232_s22, %s232_s22 }
  0x10   :  { %p239_p8 = por %p238_p7, %p237_p6 }
  0x12   :  { %p240_p9 = pnand %p239_p8, %p233_p5 }
  0x14   :  { %243 = shalt.err (!%p240_p9)
}
  0x15   :  { %21 = dma.hbm_to_vmem [thread:$0]  %s337_s0, 128, %s19_s18, [#allocation3]  }
  0x16   :  { %s292_s25 = smov [#allocation7]  }
  0x17   :  { %s37_s26 = sshll.u32 %s292_s25, 4  ;;  %s38_s26 = int_to_ptr.vmem [resolvable:$true] %s37_s26 }
  0x18   :  { %s252_s27 = scalar_lea.vmem %s38_s26, 2560  ;;  %p257_p11 = scmp.lt.s32.totalorder %s38_s26, %s38_s26 }
  0x19   :  { %p253_p10 = scmp.ne.s32.totalorder %s38_s26, %s252_s27  ;;  %p258_p12 = scmp.lt.s32.totalorder %s252_s27, %s252_s27 }
  0x1b   :  { %p259_p13 = por %p258_p12, %p257_p11 }
  0x1d   :  { %p260_p0 = pnand %p259_p13, %p253_p10 }
  0x1f   :  { %263 = shalt.err (!%p260_p0)
}
  0x20   :  { %s293_s1 = smov 256   ;;  %s294_s28 = smov 16  }
  0x21   :  { %43 = dma.hbm_to_vmem [thread:$0]  %s339_s2, 2560, %s38_s26, [#allocation6], %s293_s1, %s293_s1, %s294_s28  }
  0x22   :  { %284 = dma.done.wait [#allocation3], 128  }
  0x23   :  { %285 = vsyncadd [#allocation3], 4294967168 }
  0x24   :  { %286 = dma.done.wait [#allocation6], 2688  }
  0x25   :  { %287 = vsyncadd [#allocation6], 4294964608  ;;  %v295_v0 = vmov 0.0   ;;  %v75_v1 = vld [vmem:[#allocation7 + $0x98] sm:$0xff]  ;;  %v74_v2 = vld [vmem:[#allocation7 + $0x90] sm:$0xff]  ;;  %vm88_vm0 = vcmask 654336   ;;  %v78_v22 = vlaneseq }
  0x26   :  { %156 = vmatprep.mubr.f32.mxu0 %v295_v0  ;;  %v73_v3 = vld [vmem:[#allocation7 + $0x88] sm:$0xff]  ;;  %104 = vmatprep.subr.mxu0 %v75_v1  ;;  %v72_v4 = vld [vmem:[#allocation7 + $0x80] sm:$0xff]  ;;  %v71_v5 = vld [vmem:[#allocation7 + $0x78] sm:$0xff]  ;;  %s296_s5 = smov [#allocation8]  }
  0x27   :  { %105 = vmatpush1.msra.mxu0 %v74_v2  ;;  %v70_v6 = vld [vmem:[#allocation7 + $0x70] sm:$0xff]  ;;  %v69_v7 = vld [vmem:[#allocation7 + $0x68] sm:$0xff]  ;;  %v68_v8 = vld [vmem:[#allocation7 + $0x60] sm:$0xff]  ;;  %v79_v23 = vshrl.u32 %v78_v22, 7  ;;  %s181_s6 = sshll.u32 %s296_s5, 4  ;;  %s182_s6 = int_to_ptr.vmem [resolvable:$true] %s181_s6 }
  0x28   :  { %106 = vmatprep.subr.mxu0 %v73_v3  ;;  %v67_v9 = vld [vmem:[#allocation7 + $0x58] sm:$0xff]  ;;  %v66_v10 = vld [vmem:[#allocation7 + $0x50] sm:$0xff]  ;;  %v65_v11 = vld [vmem:[#allocation7 + $0x48] sm:$0xff]  ;;  %p269_p2 = scmp.lt.s32.totalorder %s182_s6, %s182_s6 }
  0x29   :  { %107 = vmatpush1.msra.mxu0 %v72_v4  ;;  %v64_v12 = vld [vmem:[#allocation7 + $0x40] sm:$0xff]  ;;  %v63_v13 = vld [vmem:[#allocation7 + $0x38] sm:$0xff]  ;;  %v62_v14 = vld [vmem:[#allocation7 + $0x30] sm:$0xff]  ;;  %v80_v24 = vsub.s32 0, %v79_v23  ;;  %v84_v25 = vsub.s32 1, %v79_v23 }
  0x2a   :  { %108 = vmatprep.subr.mxu0 %v71_v5  ;;  %v61_v15 = vld [vmem:[#allocation7 + $0x28] sm:$0xff]  ;;  %v60_v16 = vld [vmem:[#allocation7 + $0x20] sm:$0xff]  ;;  %v59_v17 = vld [vmem:[#allocation7 + $0x18] sm:$0xff] }
  0x2b   :  { %109 = vmatpush1.msra.mxu0 %v70_v6  ;;  %v58_v18 = vld [vmem:[#allocation7 + $0x10] sm:$0xff]  ;;  %v57_v19 = vld [vmem:[#allocation7 + $0x8] sm:$0xff]  ;;  %v56_v20 = vld [vmem:[#allocation7] sm:$0xff] }
  0x2c   :  { %110 = vmatprep.subr.mxu0 %v69_v7  ;;  %v55_v21 = vld [vmem:[#allocation2] sm:$0xff]  ;;  %v170_v37 = vld [vmem:[#allocation5] sm:$0xff] }
  0x2d   :  { %111 = vmatpush1.msra.mxu0 %v68_v8  ;;  %v76_v26 = vld [vmem:[%s340_s3] sm:$0x3]  ;;  %s264_s3 = scalar_lea.vmem %s182_s6, 128 }
  0x2e   :  { %112 = vmatprep.subr.mxu0 %v67_v9  ;;  %v81_v27 = vrot.slane %v76_v26, %v80_v24  ;;  %v85_v28 = vrot.slane %v76_v26, %v84_v25  ;;  %p265_p1 = scmp.ne.s32.totalorder %s182_s6, %s264_s3  ;;  %p270_p3 = scmp.lt.s32.totalorder %s264_s3, %s264_s3 }
  0x2f   :  { %113 = vmatpush1.msra.mxu0 %v66_v10 }
  0x30   :  { %114 = vmatprep.subr.mxu0 %v65_v11  ;;  %p271_p4 = por %p270_p3, %p269_p2 }
  0x31   :  { %115 = vmatpush1.msra.mxu0 %v64_v12 }
  0x32   :  { %116 = vmatprep.subr.mxu0 %v63_v13  ;;  %p272_p5 = pnand %p271_p4, %p265_p1 }
  0x33   :  { %117 = vmatpush1.msra.mxu0 %v62_v14 }
  0x34   :  { %118 = vmatprep.subr.mxu0 %v61_v15 }
  0x35   :  { %119 = vmatpush1.msra.mxu0 %v60_v16 }
  0x36   :  { %120 = vmatprep.subr.mxu0 %v59_v17 }
  0x37   :  { %121 = vmatpush1.msra.mxu0 %v58_v18 }
  0x38   :  { %122 = vmatprep.subr.mxu0 %v57_v19 }
  0x39   :  { %123 = vmatpush1.msra.mxu0 %v56_v20 }
  0x3a   :  { %191 = vmatmul.mubr.msk.f32.vlgmr.msra.gmra.mxu0 %vm88_vm0, %v55_v21 }
  0xfa   :  { %v158_v29 = vpop.f32.mrf.mxu0 }
  0xfb   :  { %v159_v31 = vadd.f32 %v158_v29, %v81_v27 }
  0xfc   :  { %v160_v30 = vpop.f32.mrf.mxu0 }
  0xfd   :  { %v161_v32 = vadd.f32 %v160_v30, %v85_v28  ;;  %v171_v38 = vsub.f32 %v159_v31, %v170_v37 }
  0xff   :  { %v163_v33 = vadd.f32 %v161_v32, %v159_v31 }
 0x101   :  { %v192_v34 = vmul.f32 -1.442695, %v163_v33 }
 0x103   :  { %200 = vpow2.f32 %v192_v34 }
 0x110   :  { %v201_v35 = vpop.eup %200 }
 0x111   :  { %v167_v36 = vadd.f32 1.0, %v201_v35 }
 0x113   :  { %202 = vrcp.f32 %v167_v36 }
 0x120   :  { %v203_v39 = vpop.eup %202 }
 0x121   :  { %v172_v40 = vmul.f32 %v203_v39, %v171_v38 }
 0x123   :  { %v173_v41 = vadd.f32 %v172_v40, %v170_v37 }
 0x125   :  { %174 = vst [vmem:[#allocation8] sm:$0xff] %v173_v41 }
 0x126   :  { %275 = shalt.err (!%p272_p5)
}
 0x127   :  { %184 = dma.vmem_to_hbm [thread:$0]  %s182_s6, 128, %s341_s4, [#allocation4]  }
 0x128   :  { %288 = dma.done.wait [#allocation4], 128  }
 0x129   :  { %289 = vsyncadd [#allocation4], 4294967168 }
 0x12a   :  { %188 = vsyncpa [#allocation3], 1 }
 0x12b   :  { %189 = vsyncpa [#allocation6], 1 }
 0x12c   :  { %190 = vsyncpa [#allocation4], 1 }

</bundles_post_ra>
